<compile_context>
chip_gen: v5e
topology: v5e:2x2
jax: 0.10.0
libtpu: 0.0.40
codegen_flags: <defaults>
</compile_context>

<pallas_src>
import functools

import jax
import jax.numpy as jnp
from jax.experimental import pallas as pl
from jax.experimental.pallas import tpu as pltpu


def _knn_kernel(q_ref, kt_ref, ksq_ref, idx_ref, *, k):
    """One (batch, row-tile) grid step.

    q_ref   : (1, TQ, C)  normalized query rows (this tile only)
    kt_ref  : (1, C, N)   normalized keys, pre-transposed (resident per batch)
    ksq_ref : (1, 1, N)   per-key squared L2 norms (f32)
    idx_ref : (1, TQ, k)  int32 neighbor indices (single dense store)
    """
    n_points = kt_ref.shape[2]
    tq = q_ref.shape[1]

    q = q_ref[0]            # (TQ, C)
    kt = kt_ref[0]          # (C, N)
    key_sq = ksq_ref[0]     # (1, N)

    # Ranking distance: ||x_j||^2 - 2 x_i.x_j  (row-constant ||x_i||^2 dropped;
    # top-k indices are invariant to a per-row constant).  Canonical
    # (TQ,C)x(C,N) feeds the MXU with no in-kernel transpose of the key block.
    inner = jnp.dot(q, kt, preferred_element_type=jnp.float32)      # (TQ, N)
    rank = key_sq - 2.0 * inner                                     # (TQ, N)

    # Pack the lane index into the low ceil(log2 N) mantissa bits so each of
    # the k selections is a single cross-lane (XLU) min.  Packed values are all
    # distinct, so the j-th smallest is recovered with a read-only threshold
    # (no knockout rewrite of the (TQ, N) block).
    idx_bits = max(1, (n_points - 1).bit_length())
    low_mask = (1 << idx_bits) - 1
    high_mask = jnp.int32(~low_mask)
    lane = jax.lax.broadcasted_iota(jnp.int32, (1, n_points), 1)    # (1, N)
    cur = pltpu.bitcast(
        (pltpu.bitcast(rank, jnp.int32) & high_mask) | lane, jnp.float32)

    col = jax.lax.broadcasted_iota(jnp.int32, (tq, k), 1)           # (TQ, k)

    def body(j, carry):
        prev, acc = carry
        cand = jnp.where(cur > prev, cur, jnp.inf)                  # in vregs
        sel = jnp.min(cand, axis=-1, keepdims=True)                 # (TQ, 1)
        sel_idx = pltpu.bitcast(sel, jnp.int32) & low_mask          # (TQ, 1)
        acc = jnp.where(col == j, sel_idx, acc)                     # (TQ, k)
        return sel, acc

    init = (jnp.full((tq, 1), -jnp.inf, dtype=jnp.float32),
            jnp.zeros((tq, k), dtype=jnp.int32))
    _, acc = jax.lax.fori_loop(0, k, body, init, unroll=True)

    idx_ref[0] = acc        # one dense store per tile


def _vmem_bytes_estimate(n, c, tq, k):
    """Conservative per-step VMEM footprint (bytes, f32 accounting)."""
    return 4 * (2 * c * n          # resident transposed key block (dbl-buffered)
                + 2 * tq * c       # query tile (dbl-buffered)
                + 2 * n            # key_sq block (dbl-buffered)
                + 2 * tq * k       # output block (dbl-buffered)
                + 4 * tq * n       # inner / rank / packed / candidate temps
                + 4 * n)           # iotas / scalars slack


def _vmem_capacity_bytes():
    try:
        return int(pltpu.get_tpu_info().vmem_capacity_bytes)
    except Exception:
        return 64 << 20            # conservative fallback (v7x per-TC)


def _pick_row_tile(n, c, k, budget, cap=512):
    """Largest row tile dividing N (multiple of 8, or N itself) within budget."""
    cands = [t for t in range(min(cap, n), 0, -1)
             if n % t == 0 and (t % 8 == 0 or t == n)]
    if not cands:
        # TODO(synk): pad N instead of falling back to an O(N^2) working set.
        return n
    for t in cands:
        if _vmem_bytes_estimate(n, c, t, k) <= budget:
            return t
    return cands[-1]


def knn_edge_index(x, k, compute_dtype=jnp.float32):
    """x: (B, C, N, 1) float array.  Returns edge_index (2, B, N, k) int32."""
    B, C, N, _ = x.shape

    # Glue (matches the PyTorch module): transpose(2,1).squeeze(-1) -> (B,N,C),
    # then F.normalize(p=2, dim=1): L2-normalize every feature column over N.
    # Hoisted out of the kernel so it runs once per batch, not once per row tile.
    xp = jnp.transpose(jnp.squeeze(x, -1), (0, 2, 1)).astype(jnp.float32)
    col_norm = jnp.sqrt(jnp.sum(xp * xp, axis=1, keepdims=True))     # (B,1,C)
    xn = xp / jnp.maximum(col_norm, 1e-12)                           # (B,N,C)
    key_sq = jnp.transpose(
        jnp.sum(xn * xn, axis=-1, keepdims=True), (0, 2, 1))         # (B,1,N)
    xnT = jnp.transpose(xn, (0, 2, 1))                               # (B,C,N)

    xn = xn.astype(compute_dtype)
    xnT = xnT.astype(compute_dtype)
    key_sq = key_sq.astype(jnp.float32)

    vmem_cap = _vmem_capacity_bytes()
    tq = _pick_row_tile(N, C, k, budget=int(0.70 * vmem_cap))
    # v7x has 2 TensorCores/chip: with B == 1 keep >= 2 row-tile steps so both
    # cores get work.
    if B == 1 and N // tq < 2:
        smaller = [t for t in range(tq // 2, 0, -1) if N % t == 0 and t % 8 == 0]
        if smaller:
            tq = smaller[0]

    grid = (B, N // tq)
    est = _vmem_bytes_estimate(N, C, tq, k)
    vmem_limit = int(min(max(2 * est, 32 << 20), int(0.85 * vmem_cap)))

    nn_idx = pl.pallas_call(
        functools.partial(_knn_kernel, k=k),
        out_shape=jax.ShapeDtypeStruct((B, N, k), jnp.int32),
        grid=grid,
        in_specs=[
            pl.BlockSpec((1, tq, C), lambda b, i: (b, i, 0)),   # query rows
            pl.BlockSpec((1, C, N), lambda b, i: (b, 0, 0)),    # keys^T resident
            pl.BlockSpec((1, 1, N), lambda b, i: (b, 0, 0)),    # key sq-norms
        ],
        out_specs=pl.BlockSpec((1, tq, k), lambda b, i: (b, i, 0)),
        compiler_params=pltpu.CompilerParams(
            dimension_semantics=("parallel", "parallel"),
            vmem_limit_bytes=vmem_limit),
    )(xn, xnT, key_sq)

    center_idx = jnp.broadcast_to(
        jnp.arange(N, dtype=jnp.int32)[None, :, None], (B, N, k))
    return jnp.stack((nn_idx, center_idx), axis=0)                   # (2,B,N,k)


if __name__ == "__main__":
    key = jax.random.PRNGKey(0)
    B, C, N = 2, 4, 16
    k = 4
    x = jax.random.normal(key, (B, C, N, 1), dtype=jnp.float32)

    edge_index = jax.block_until_ready(knn_edge_index(x, k))

    assert edge_index.shape == (2, B, N, k), edge_index.shape
    assert edge_index.dtype == jnp.int32
    assert int(jnp.min(edge_index)) >= 0 and int(jnp.max(edge_index)) < N
    # center indices are arange(N)
    assert bool(jnp.all(
        edge_index[1] == jnp.arange(N, dtype=jnp.int32)[None, :, None]))

    # Value-level check against a pure-JAX reference (robust to tie-break and
    # index-order differences): the k selected distances must equal the k
    # smallest distances per row.
    xp = jnp.transpose(jnp.squeeze(x, -1), (0, 2, 1)).astype(jnp.float32)
    xn = xp / jnp.maximum(
        jnp.sqrt(jnp.sum(xp * xp, axis=1, keepdims=True)), 1e-12)
    xsq = jnp.sum(xn * xn, axis=-1, keepdims=True)
    dist = xsq - 2.0 * jnp.einsum("bnc,bmc->bnm", xn, xn) + jnp.swapaxes(xsq, 1, 2)
    ref_vals = -jax.lax.top_k(-dist, k)[0]                           # ascending
    got_vals = jnp.sort(
        jnp.take_along_axis(dist, edge_index[0], axis=-1), axis=-1)
    assert bool(jnp.allclose(ref_vals, got_vals, atol=1e-4, rtol=1e-4)), (
        float(jnp.max(jnp.abs(ref_vals - got_vals))))

    print("KERNEL_OK")
</pallas_src>

<mosaic_0001>
module attributes {stable_mosaic.version = 11 : i64} {
  func.func @_knn_kernel(%arg0: i32, %arg1: i32, %arg2: memref<1x16x4xf32, #tpu.memory_space<vmem>>, %arg3: memref<1x4x16xf32, #tpu.memory_space<vmem>>, %arg4: memref<1x1x16xf32, #tpu.memory_space<vmem>>, %arg5: memref<1x16x4xi32, #tpu.memory_space<vmem>>) attributes {dimension_semantics = [#tpu.dimension_semantics<parallel>, #tpu.dimension_semantics<parallel>], iteration_bounds = array<i64: 2, 1>, scalar_prefetch = 0 : i64, scratch_operands = 0 : i64, tpu.core_type = #tpu.core_type<tc>, window_params = [{transform_indices = @transform_0, window_bounds = array<i64: 1, 16, 4>}, {transform_indices = @transform_1, window_bounds = array<i64: 1, 4, 16>}, {transform_indices = @transform_2, window_bounds = array<i64: 1, 1, 16>}, {transform_indices = @transform_3, window_bounds = array<i64: 1, 16, 4>}]} {
    %c0 = arith.constant 0 : index
    %c0_0 = arith.constant 0 : index
    %c0_1 = arith.constant 0 : index
    %0 = vector.load %arg2[%c0, %c0_0, %c0_1] : memref<1x16x4xf32, #tpu.memory_space<vmem>>, vector<1x16x4xf32>
    %1 = vector.shape_cast %0 : vector<1x16x4xf32> to vector<16x4xf32>
    %c0_2 = arith.constant 0 : index
    %c0_3 = arith.constant 0 : index
    %c0_4 = arith.constant 0 : index
    %2 = vector.load %arg3[%c0_2, %c0_3, %c0_4] : memref<1x4x16xf32, #tpu.memory_space<vmem>>, vector<1x4x16xf32>
    %3 = vector.shape_cast %2 : vector<1x4x16xf32> to vector<4x16xf32>
    %c0_5 = arith.constant 0 : index
    %c0_6 = arith.constant 0 : index
    %c0_7 = arith.constant 0 : index
    %4 = vector.load %arg4[%c0_5, %c0_6, %c0_7] : memref<1x1x16xf32, #tpu.memory_space<vmem>>, vector<1x1x16xf32>
    %5 = vector.shape_cast %4 : vector<1x1x16xf32> to vector<1x16xf32>
    %cst = arith.constant dense<0.000000e+00> : vector<16x16xf32>
    %6 = tpu.matmul %1, %3, %cst {dimension_numbers = #tpu.dot_dimension_numbers<[1], [0], [0], [1], [0, 0, 1, 1], [], []>} : vector<16x4xf32>, vector<4x16xf32>, vector<16x16xf32> -> vector<16x16xf32>
    %cst_8 = arith.constant 2.000000e+00 : f32
    %7 = vector.broadcast %cst_8 : f32 to vector<16x16xf32>
    %8 = arith.mulf %7, %6 : vector<16x16xf32>
    %9 = vector.broadcast %5 : vector<1x16xf32> to vector<16x16xf32>
    %10 = arith.subf %9, %8 : vector<16x16xf32>
    %11 = tpu.iota {dimensions = array<i32: 1>} : vector<1x16xi32>
    %12 = tpu.bitcast %10 : vector<16x16xf32> -> vector<16x16xi32>
    %c-16_i32 = arith.constant -16 : i32
    %13 = vector.broadcast %c-16_i32 : i32 to vector<16x16xi32>
    %14 = arith.andi %12, %13 : vector<16x16xi32>
    %15 = vector.broadcast %11 : vector<1x16xi32> to vector<16x16xi32>
    %16 = arith.ori %14, %15 : vector<16x16xi32>
    %17 = tpu.bitcast %16 : vector<16x16xi32> -> vector<16x16xf32>
    %18 = tpu.iota {dimensions = array<i32: 1>} : vector<16x4xi32>
    %cst_9 = arith.constant 0xFF800000 : f32
    %19 = vector.broadcast %cst_9 : f32 to vector<16x1xf32>
    %c0_i32 = arith.constant 0 : i32
    %20 = vector.broadcast %c0_i32 : i32 to vector<16x4xi32>
    %c0_i32_10 = arith.constant 0 : i32
    %21 = vector.broadcast %19 : vector<16x1xf32> to vector<16x16xf32>
    %22 = arith.cmpf ogt, %17, %21 : vector<16x16xf32>
    %cst_11 = arith.constant 0x7F800000 : f32
    %23 = vector.broadcast %cst_11 : f32 to vector<16x16xf32>
    %24 = arith.select %22, %17, %23 : vector<16x16xi1>, vector<16x16xf32>
    %cst_12 = arith.constant dense<0x7F800000> : vector<16xf32>
    %25 = vector.multi_reduction <minimumf>, %24, %cst_12 [1] : vector<16x16xf32> to vector<16xf32>
    %26 = vector.shape_cast %25 : vector<16xf32> to vector<16x1xf32>
    %27 = tpu.bitcast %26 : vector<16x1xf32> -> vector<16x1xi32>
    %c15_i32 = arith.constant 15 : i32
    %28 = vector.broadcast %c15_i32 : i32 to vector<16x1xi32>
    %29 = arith.andi %27, %28 : vector<16x1xi32>
    %30 = vector.broadcast %c0_i32_10 : i32 to vector<16x4xi32>
    %31 = arith.cmpi eq, %18, %30 : vector<16x4xi32>
    %32 = vector.shape_cast %29 : vector<16x1xi32> to vector<16x1xi32>
    %33 = vector.broadcast %32 : vector<16x1xi32> to vector<16x4xi32>
    %34 = arith.select %31, %33, %20 : vector<16x4xi1>, vector<16x4xi32>
    %c1_i32 = arith.constant 1 : i32
    %35 = vector.broadcast %26 : vector<16x1xf32> to vector<16x16xf32>
    %36 = arith.cmpf ogt, %17, %35 : vector<16x16xf32>
    %cst_13 = arith.constant 0x7F800000 : f32
    %37 = vector.broadcast %cst_13 : f32 to vector<16x16xf32>
    %38 = arith.select %36, %17, %37 : vector<16x16xi1>, vector<16x16xf32>
    %cst_14 = arith.constant dense<0x7F800000> : vector<16xf32>
    %39 = vector.multi_reduction <minimumf>, %38, %cst_14 [1] : vector<16x16xf32> to vector<16xf32>
    %40 = vector.shape_cast %39 : vector<16xf32> to vector<16x1xf32>
    %41 = tpu.bitcast %40 : vector<16x1xf32> -> vector<16x1xi32>
    %c15_i32_15 = arith.constant 15 : i32
    %42 = vector.broadcast %c15_i32_15 : i32 to vector<16x1xi32>
    %43 = arith.andi %41, %42 : vector<16x1xi32>
    %44 = vector.broadcast %c1_i32 : i32 to vector<16x4xi32>
    %45 = arith.cmpi eq, %18, %44 : vector<16x4xi32>
    %46 = vector.shape_cast %43 : vector<16x1xi32> to vector<16x1xi32>
    %47 = vector.broadcast %46 : vector<16x1xi32> to vector<16x4xi32>
    %48 = arith.select %45, %47, %34 : vector<16x4xi1>, vector<16x4xi32>
    %c2_i32 = arith.constant 2 : i32
    %49 = vector.broadcast %40 : vector<16x1xf32> to vector<16x16xf32>
    %50 = arith.cmpf ogt, %17, %49 : vector<16x16xf32>
    %cst_16 = arith.constant 0x7F800000 : f32
    %51 = vector.broadcast %cst_16 : f32 to vector<16x16xf32>
    %52 = arith.select %50, %17, %51 : vector<16x16xi1>, vector<16x16xf32>
    %cst_17 = arith.constant dense<0x7F800000> : vector<16xf32>
    %53 = vector.multi_reduction <minimumf>, %52, %cst_17 [1] : vector<16x16xf32> to vector<16xf32>
    %54 = vector.shape_cast %53 : vector<16xf32> to vector<16x1xf32>
    %55 = tpu.bitcast %54 : vector<16x1xf32> -> vector<16x1xi32>
    %c15_i32_18 = arith.constant 15 : i32
    %56 = vector.broadcast %c15_i32_18 : i32 to vector<16x1xi32>
    %57 = arith.andi %55, %56 : vector<16x1xi32>
    %58 = vector.broadcast %c2_i32 : i32 to vector<16x4xi32>
    %59 = arith.cmpi eq, %18, %58 : vector<16x4xi32>
    %60 = vector.shape_cast %57 : vector<16x1xi32> to vector<16x1xi32>
    %61 = vector.broadcast %60 : vector<16x1xi32> to vector<16x4xi32>
    %62 = arith.select %59, %61, %48 : vector<16x4xi1>, vector<16x4xi32>
    %c3_i32 = arith.constant 3 : i32
    %63 = vector.broadcast %54 : vector<16x1xf32> to vector<16x16xf32>
    %64 = arith.cmpf ogt, %17, %63 : vector<16x16xf32>
    %cst_19 = arith.constant 0x7F800000 : f32
    %65 = vector.broadcast %cst_19 : f32 to vector<16x16xf32>
    %66 = arith.select %64, %17, %65 : vector<16x16xi1>, vector<16x16xf32>
    %cst_20 = arith.constant dense<0x7F800000> : vector<16xf32>
    %67 = vector.multi_reduction <minimumf>, %66, %cst_20 [1] : vector<16x16xf32> to vector<16xf32>
    %68 = vector.shape_cast %67 : vector<16xf32> to vector<16x1xf32>
    %69 = tpu.bitcast %68 : vector<16x1xf32> -> vector<16x1xi32>
    %c15_i32_21 = arith.constant 15 : i32
    %70 = vector.broadcast %c15_i32_21 : i32 to vector<16x1xi32>
    %71 = arith.andi %69, %70 : vector<16x1xi32>
    %72 = vector.broadcast %c3_i32 : i32 to vector<16x4xi32>
    %73 = arith.cmpi eq, %18, %72 : vector<16x4xi32>
    %74 = vector.shape_cast %71 : vector<16x1xi32> to vector<16x1xi32>
    %75 = vector.broadcast %74 : vector<16x1xi32> to vector<16x4xi32>
    %76 = arith.select %73, %75, %62 : vector<16x4xi1>, vector<16x4xi32>
    %c4_i32 = arith.constant 4 : i32
    %c0_22 = arith.constant 0 : index
    %c0_23 = arith.constant 0 : index
    %c0_24 = arith.constant 0 : index
    %77 = vector.load %arg5[%c0_22, %c0_23, %c0_24] : memref<1x16x4xi32, #tpu.memory_space<vmem>>, vector<1x16x4xi32>
    %78 = vector.shape_cast %77 : vector<1x16x4xi32> to vector<16x4xi32>
    %79 = vector.shape_cast %76 : vector<16x4xi32> to vector<1x16x4xi32>
    tpu.vector_store %arg5[%c0_22, %c0_23, %c0_24], %79 {strides = array<i32>} : memref<1x16x4xi32, #tpu.memory_space<vmem>>, vector<1x16x4xi32>,
    return
  }
  func.func @transform_0(%arg0: i32, %arg1: i32) -> (i32, i32, i32) {
    %c0_i32 = arith.constant 0 : i32
    %c0_i32_0 = arith.constant 0 : i32
    return %arg0, %arg1, %c0_i32 : i32, i32, i32
  }
  func.func @transform_1(%arg0: i32, %arg1: i32) -> (i32, i32, i32) {
    %c0_i32 = arith.constant 0 : i32
    %c0_i32_0 = arith.constant 0 : i32
    %c0_i32_1 = arith.constant 0 : i32
    return %arg0, %c0_i32, %c0_i32_0 : i32, i32, i32
  }
  func.func @transform_2(%arg0: i32, %arg1: i32) -> (i32, i32, i32) {
    %c0_i32 = arith.constant 0 : i32
    %c0_i32_0 = arith.constant 0 : i32
    %c0_i32_1 = arith.constant 0 : i32
    return %arg0, %c0_i32, %c0_i32_0 : i32, i32, i32
  }
  func.func @transform_3(%arg0: i32, %arg1: i32) -> (i32, i32, i32) {
    %c0_i32 = arith.constant 0 : i32
    %c0_i32_0 = arith.constant 0 : i32
    return %arg0, %arg1, %c0_i32 : i32, i32, i32
  }
}

</mosaic_0001>

<bundles_post_ra>
// kernel: tpu_custom_call.1
= control target key start
LH: loop header
LB: loop body
LE: loop exit
PB: predicated region body
PF: predicated region fallthrough
CT: control target
= control target key end

     0   :  { %s562_s12 = smov 0   ;;  %s564_s13 = smov 0   ;;  %s642_s0 = inlined_call_operand.vmem [shape: f32[2,16,4], index: 0, kind: input, shape index: {}]   ;;  %s643_s1 = inlined_call_operand.vmem [shape: f32[2,4,16], index: 1, kind: input, shape index: {}]   ;;  %s644_s2 = inlined_call_operand.vmem [shape: f32[2,1,16], index: 2, kind: input, shape index: {}]   ;;  %s645_s3 = inlined_call_operand.vmem [shape: s32[2,16,4], index: 3, kind: output, shape index: {}]  }
   0x1   :  { %s566_s14 = smov 0  }
   0x2 LB: > { %s25_s15 = sadd.s32 1, %s536_s13  ;;  %p479_p0 = scmp.ge.s32.totalorder %s540_s14, 1  ;;  %s540_s14 = sphi %s566_s14, %s13_s14   ;;  %s536_s13 = sphi %s564_s13, %s647_s13   ;;  %s532_s12 = sphi %s562_s12, %s646_s12  }
   0x3   : > { %p27_p1 = scmp.ge.s32.totalorder %s25_s15, 2  ;;  %p175_p2 = scmp.lt.s32.totalorder %s540_s14, 3 }
   0x5   : > { %s649_s15 = smov (%p27_p1, %s25_s15), 0  ;;  %p176_p3 = pnand %p479_p0, %p175_p2 }
   0x6   : > { %p215_p4 = scmp.lt.s32.totalorder (!%p176_p3), %s532_s12, 1 }
   0x7   : > { %179 = sbr.rel (%p176_p3) target bundleno = 639 (0x27f), region = 32 }
   0xc   : > { %s651_s12 = smov (!%p215_p4, %s532_s12), 1  ;;  %vm252_vm0 = vcmask 1043456   ;;  %vm245_vm1 = vcmask 31744   ;;  %v286_v4 = vlaneseq  ;;  %vm300_vm2 = vcmask 130048  }
   0xd   : > { %s482_s16 = sshll.u32 %s651_s12, 2  ;;  %s490_s17 = sshll.u32 %s651_s12, 4 }
   0xe   : > { %s227_s20 = scalar_lea.vmem %s643_s1, %s482_s16  ;;  %s222_s23 = scalar_lea.vmem %s642_s0, %s490_s17  ;;  %v598_v10 = vand.u32 127, %v286_v4 }
   0xf   : > { %v243_v0 = vld [vmem:[%s227_s20] sm:$0xf]  ;;  %v242_v2 = vld [vmem:[%s222_s23 + $0x8] sm:$0xff]  ;;  %s230_s26 = scalar_lea.vmem %s644_s2, %s651_s12  ;;  %s239_s29 = scalar_lea.vmem %s645_s3, %s490_s17 }
  0x10   : > { %v241_v1 = vld [vmem:[%s222_s23] sm:$0xff]  ;;  %485 = vmatpush.msk.msra.mxu0 %vm252_vm0, %v243_v0  ;;  %492 = vmatpush.msk.msra.mxu1 %vm252_vm0, %v243_v0  ;;  %vm311_vm7 = vcmp.eq.s32.totalorder %v598_v10, 0  ;;  %vm328_vm8 = vcmp.eq.s32.totalorder %v598_v10, 1  ;;  %vm345_vm11 = vcmp.eq.s32.totalorder %v598_v10, 2  ;;  %vm362_vm14 = vcmp.eq.s32.totalorder %v598_v10, 3 }
  0x11   : > { %486 = vmatmul.msk.f32.vlgmr.msra.gmra.mxu0 %vm245_vm1, %v241_v1  ;;  %487 = vmatmul.msk.f32.vlgmr.msra.gmra.mxu1 %vm245_vm1, %v242_v2  ;;  %v517_v3 = vld [vmem:[%s230_s26] ss:$0 sm:$0xff] }
  0x8e   : > { %v273_v5 = vpop.f32.mrf.mxu0  ;;  %v276_v6 = vpop.f32.mrf.mxu1 }
  0x8f   : > { %v279_v7 = vmul.f32 2.0, %v273_v5  ;;  %v280_v8 = vmul.f32 2.0, %v276_v6 }
  0x91   : > { %v284_v9 = vsub.f32 %v517_v3, %v279_v7  ;;  %v285_v11 = vsub.f32 %v517_v3, %v280_v8 }
  0x93   : > { %v290_v12 = vand.u32 4294967280, %v284_v9  ;;  %v291_v13 = vand.u32 4294967280, %v285_v11 }
  0x95   : > { %v292_v14 = vor.u32 %v290_v12, %v598_v10  ;;  %v293_v15 = vor.u32 %v291_v13, %v598_v10 }
  0x97   : > { %vm296_vm3 = vcmp.gt.f32.partialorder %v292_v14, -inf  ;;  %vm297_vm4 = vcmp.gt.f32.partialorder %v293_v15, -inf }
  0x98   : > { %v298_v16 = vsel %vm296_vm3, %v292_v14, inf  ;;  %v299_v18 = vsel %vm297_vm4, %v293_v15, inf }
  0x99   : > { %v301_v17 = vsel %vm300_vm2, %v298_v16, inf  ;;  %v304_v19 = vsel %vm300_vm2, %v299_v18, inf }
  0x9a   : > { %302 = vmin.xlane.f32.xlu0 %v301_v17 }
  0xa2   : > { %305 = vmin.xlane.f32.xlu0 %v304_v19 }
 0x10d   : > { %v303_v20 = vpop.xlane.xlu0 %302 }
 0x10e   : > { %vm314_vm5 = vcmp.gt.f32.partialorder %v292_v14, %v303_v20  ;;  %v309_v26 = vand.u32 15, %v303_v20 }
 0x10f   : > { %v316_v21 = vsel %vm314_vm5, %v292_v14, inf }
 0x110   : > { %v318_v22 = vsel %vm300_vm2, %v316_v21, inf  ;;  %v312_v29 = vsel %vm311_vm7, %v309_v26, 0 }
 0x111   : > { %319 = vmin.xlane.f32.xlu1 %v318_v22 }
 0x115   : > { %v306_v23 = vpop.xlane.xlu0 %305 }
 0x116   : > { %vm315_vm6 = vcmp.gt.f32.partialorder %v293_v15, %v306_v23  ;;  %v310_v47 = vand.u32 15, %v306_v23 }
 0x117   : > { %v317_v24 = vsel %vm315_vm6, %v293_v15, inf }
 0x118   : > { %v321_v25 = vsel %vm300_vm2, %v317_v24, inf  ;;  %v313_v50 = vsel %vm311_vm7, %v310_v47, 0 }
 0x119   : > { %322 = vmin.xlane.f32.xlu1 %v321_v25 }
 0x184   : > { %v320_v27 = vpop.xlane.xlu1 %319 }
 0x185   : > { %v326_v28 = vand.u32 15, %v320_v27  ;;  %vm331_vm9 = vcmp.gt.f32.partialorder %v292_v14, %v320_v27 }
 0x186   : > { %v333_v30 = vsel %vm331_vm9, %v292_v14, inf }
 0x187   : > { %v329_v31 = vsel %vm328_vm8, %v326_v28, %v312_v29  ;;  %v335_v32 = vsel %vm300_vm2, %v333_v30, inf }
 0x188   : > { %336 = vmin.xlane.f32.xlu2 %v335_v32 }
 0x18c   : > { %v323_v33 = vpop.xlane.xlu1 %322 }
 0x18d   : > { %vm332_vm10 = vcmp.gt.f32.partialorder %v293_v15, %v323_v33  ;;  %v327_v48 = vand.u32 15, %v323_v33 }
 0x18e   : > { %v334_v34 = vsel %vm332_vm10, %v293_v15, inf }
 0x18f   : > { %v338_v35 = vsel %vm300_vm2, %v334_v34, inf  ;;  %v330_v52 = vsel %vm328_vm8, %v327_v48, %v313_v50 }
 0x190   : > { %339 = vmin.xlane.f32.xlu2 %v338_v35 }
 0x1fb   : > { %v337_v36 = vpop.xlane.xlu2 %336 }
 0x1fc   : > { %v343_v37 = vand.u32 15, %v337_v36  ;;  %vm348_vm12 = vcmp.gt.f32.partialorder %v292_v14, %v337_v36 }
 0x1fd   : > { %v350_v38 = vsel %vm348_vm12, %v292_v14, inf }
 0x1fe   : > { %v346_v39 = vsel %vm345_vm11, %v343_v37, %v329_v31  ;;  %v352_v40 = vsel %vm300_vm2, %v350_v38, inf }
 0x1ff   : > { %353 = vmin.xlane.f32.xlu0 %v352_v40 }
 0x203   : > { %v340_v41 = vpop.xlane.xlu2 %339 }
 0x204   : > { %vm349_vm13 = vcmp.gt.f32.partialorder %v293_v15, %v340_v41  ;;  %v344_v49 = vand.u32 15, %v340_v41 }
 0x205   : > { %v351_v42 = vsel %vm349_vm13, %v293_v15, inf }
 0x206   : > { %v355_v43 = vsel %vm300_vm2, %v351_v42, inf  ;;  %v347_v54 = vsel %vm345_vm11, %v344_v49, %v330_v52 }
 0x207   : > { %356 = vmin.xlane.f32.xlu1 %v355_v43 }
 0x272   : > { %v354_v44 = vpop.xlane.xlu0 %353 }
 0x273   : > { %v360_v45 = vand.u32 15, %v354_v44 }
 0x275   : > { %v363_v46 = vsel %vm362_vm14, %v360_v45, %v346_v39 }
 0x276   : > { %365 = vst.msk [vmem:[%s239_s29] sm:$0xff] %vm245_vm1, %v363_v46 }
 0x27a   : > { %v357_v51 = vpop.xlane.xlu1 %356 }
 0x27b   : > { %v361_v53 = vand.u32 15, %v357_v51 }
 0x27d   : > { %v364_v55 = vsel %vm362_vm14, %v361_v53, %v347_v54 }
 0x27e   : > { %366 = vst.msk [vmem:[%s239_s29 + $0x8] sm:$0xff] %vm245_vm1, %v364_v55 }
 0x27f PF: > { %s13_s14 = sadd.s32 1, %s540_s14   ;;  %s646_s12 = smov %s536_s13 }
 0x280   : > { %p10_p5 = scmp.ge.s32.totalorder %s13_s14, 4   ;;  %s647_s13 = smov %s649_s15 }
 0x282   :  { %12 = sbr.rel (!%p10_p5) target bundleno = 2 (0x2), region = 68 }

</bundles_post_ra>
